<compile_context>
chip_gen: v6e
topology: v6e:2x2x1
jax: 0.10.0
libtpu: 0.0.40
codegen_flags: <defaults>
</compile_context>

<pallas_src>
import jax
import jax.numpy as jnp
from jax.experimental import pallas as pl
from jax.experimental.pallas import tpu as pltpu

SHURURU = 10      # input / output feature dim of the MLP
NUM_UNITS = 128   # hidden width
N_STEPS = 100     # diffusion steps (embedding table rows)
LANE = 128        # TPU lane width


def _round_up(n, m):
    return ((n + m - 1) // m) * m


# --------------------------------------------------------------------------
# Kernel
# --------------------------------------------------------------------------
def _mlp_diffusion_kernel(x_ref, t_ref,
                          wc0_ref, wc1_ref, wc2_ref,
                          w3_ref, b3_ref,
                          out_ref, lhs_ref):
    """One batch tile.  lhs_ref: (TB, NUM_UNITS + n_steps_pad) bf16 scratch."""
    tb = lhs_ref.shape[0]
    num_units = wc0_ref.shape[1]
    n_steps_pad = lhs_ref.shape[1] - num_units

    # One-hot(t) -> lanes [num_units : num_units + n_steps_pad), written once
    # per tile.  The embedding gathers then ride along inside the fused MXU
    # matmuls below (exact: one-hot entries are 0/1).
    # (If any t is out of [0, n_steps) the one-hot is all-zero and the folded
    #  bias drops too — same silent behaviour as v2, PyTorch would error.)
    t = t_ref[...]                                              # (TB, 1) int32
    step_ids = jax.lax.broadcasted_iota(jnp.int32, (tb, n_steps_pad), 1)
    lhs_ref[:, num_units:] = (step_ids == t).astype(lhs_ref.dtype)

    # Layer-0 activation lanes: zero the 128-wide half (rows SHURURU..127 of
    # W_cat0 are zero, but stale VMEM could be NaN), then drop the 10 real
    # features into lanes 0..9.
    lhs_ref[:, :num_units] = jnp.zeros((tb, num_units), lhs_ref.dtype)
    lhs_ref[:, :SHURURU] = x_ref[...].astype(lhs_ref.dtype)

    # Three fused blocks: tanh( [h | onehot] @ [[W_i], [E_i + b_i]] ).
    h = jnp.tanh(jnp.dot(lhs_ref[...], wc0_ref[...],
                         preferred_element_type=jnp.float32))
    lhs_ref[:, :num_units] = h.astype(lhs_ref.dtype)

    h = jnp.tanh(jnp.dot(lhs_ref[...], wc1_ref[...],
                         preferred_element_type=jnp.float32))
    lhs_ref[:, :num_units] = h.astype(lhs_ref.dtype)

    h = jnp.tanh(jnp.dot(lhs_ref[...], wc2_ref[...],
                         preferred_element_type=jnp.float32))

    # Final Linear(num_units -> SHURURU); output stays 10-wide (lane-true).
    out = jnp.dot(h.astype(w3_ref.dtype), w3_ref[...],
                  preferred_element_type=jnp.float32) + b3_ref[...]
    out_ref[...] = out.astype(out_ref.dtype)


# --------------------------------------------------------------------------
# Params
# --------------------------------------------------------------------------
def init_params(key, n_steps=N_STEPS, num_units=NUM_UNITS):
    """Deterministic synthetic parameters (shapes match the nn.Module)."""
    ks = jax.random.split(key, 11)
    scale = 0.05
    return {
        # Linear weights stored [in, out]
        "w0": jax.random.normal(ks[0], (SHURURU, num_units), jnp.float32) * scale,
        "b0": jax.random.normal(ks[1], (1, num_units), jnp.float32) * scale,
        "w1": jax.random.normal(ks[2], (num_units, num_units), jnp.float32) * scale,
        "b1": jax.random.normal(ks[3], (1, num_units), jnp.float32) * scale,
        "w2": jax.random.normal(ks[4], (num_units, num_units), jnp.float32) * scale,
        "b2": jax.random.normal(ks[5], (1, num_units), jnp.float32) * scale,
        "w3": jax.random.normal(ks[6], (num_units, SHURURU), jnp.float32) * scale,
        "b3": jax.random.normal(ks[7], (1, SHURURU), jnp.float32) * scale,
        # Embedding tables [n_steps, num_units]
        "emb0": jax.random.normal(ks[8], (n_steps, num_units), jnp.float32) * scale,
        "emb1": jax.random.normal(ks[9], (n_steps, num_units), jnp.float32) * scale,
        "emb2": jax.random.normal(ks[10], (n_steps, num_units), jnp.float32) * scale,
    }


def prepare_params(params):
    """One-time packing: fold biases b0/b1/b2 into the embedding tables, pad
    the step axis to a multiple of 128, and stack [W_i ; E_i + b_i] into a
    (K = num_units + n_steps_pad, num_units) bf16 matrix so each layer is a
    single K=256 MXU matmul against the [activation | one-hot] LHS."""
    num_units = params["w1"].shape[0]
    n_steps = params["emb0"].shape[0]
    n_steps_pad = _round_up(n_steps, LANE)

    def fold_pad(emb, b):
        e = jnp.zeros((n_steps_pad, num_units), jnp.float32)
        return e.at[:n_steps, :].set(emb + b)      # fold bias into every row

    # Layer-0 LHS only has SHURURU real lanes; rows SHURURU..num_units-1 are 0.
    w0p = jnp.zeros((num_units, num_units), jnp.float32).at[:SHURURU, :].set(
        params["w0"])

    wc0 = jnp.concatenate([w0p, fold_pad(params["emb0"], params["b0"])], axis=0)
    wc1 = jnp.concatenate([params["w1"],
                           fold_pad(params["emb1"], params["b1"])], axis=0)
    wc2 = jnp.concatenate([params["w2"],
                           fold_pad(params["emb2"], params["b2"])], axis=0)

    return {
        "wc0": wc0.astype(jnp.bfloat16),          # (num_units + n_steps_pad, num_units)
        "wc1": wc1.astype(jnp.bfloat16),
        "wc2": wc2.astype(jnp.bfloat16),
        "w3": params["w3"].astype(jnp.bfloat16),  # (num_units, SHURURU)
        "b3": params["b3"].astype(jnp.float32),   # (1, SHURURU), added in f32
    }


# --------------------------------------------------------------------------
# Forward
# --------------------------------------------------------------------------
def mlp_diffusion_forward(kparams, x, t, *, tb=8192):
    """x: [B, SHURURU] float, t: [B] int -> [B, SHURURU] float32.

    kparams must come from prepare_params().
    """
    B = x.shape[0]
    num_units = kparams["wc0"].shape[1]
    k_total = kparams["wc0"].shape[0]              # num_units + n_steps_pad

    # Balanced batch tiling: TB is a multiple of 8, no nearly-all-padding
    # remainder tile, and grid >= 2 whenever B > tb.
    n_tiles = max(1, pl.cdiv(B, tb))
    TB = _round_up(pl.cdiv(B, n_tiles), 8)
    B_pad = n_tiles * TB

    x_in = jnp.pad(x.astype(jnp.float32), ((0, B_pad - B), (0, 0)))
    t_in = jnp.pad(t.astype(jnp.int32), ((0, B_pad - B),)).reshape(B_pad, 1)

    row = lambda i: (i, 0)      # batch-tiled operands
    const = lambda i: (0, 0)    # constant block index -> DMA'd once, VMEM-resident

    out = pl.pallas_call(
        _mlp_diffusion_kernel,
        out_shape=jax.ShapeDtypeStruct((B_pad, SHURURU), jnp.float32),
        grid=(n_tiles,),
        in_specs=[
            pl.BlockSpec((TB, SHURURU), row),           # x  (last dim = full dim)
            pl.BlockSpec((TB, 1), row),                 # t
            pl.BlockSpec((k_total, num_units), const),  # [W0 ; E0 + b0]
            pl.BlockSpec((k_total, num_units), const),  # [W1 ; E1 + b1]
            pl.BlockSpec((k_total, num_units), const),  # [W2 ; E2 + b2]
            pl.BlockSpec((num_units, SHURURU), const),  # W3
            pl.BlockSpec((1, SHURURU), const),          # b3
        ],
        out_specs=pl.BlockSpec((TB, SHURURU), row),
        scratch_shapes=[pltpu.VMEM((TB, k_total), jnp.bfloat16)],
        compiler_params=pltpu.CompilerParams(
            dimension_semantics=("parallel",),          # dual-TC on v7x
            vmem_limit_bytes=48 * 1024 * 1024,
        ),
    )(x_in, t_in,
      kparams["wc0"], kparams["wc1"], kparams["wc2"],
      kparams["w3"], kparams["b3"])

    return out[:B, :]


# --------------------------------------------------------------------------
# Pure-JAX reference (mirrors the PyTorch forward, f32)
# --------------------------------------------------------------------------
def _reference_forward(params, x, t):
    e = [params["emb0"][t], params["emb1"][t], params["emb2"][t]]
    w = [params["w0"], params["w1"], params["w2"], params["w3"]]
    b = [params["b0"], params["b1"], params["b2"], params["b3"]]
    h = x
    for i in range(3):
        h = jnp.tanh(h @ w[i] + b[i] + e[i])
    return h @ w[3] + b[3]


if __name__ == "__main__":
    key = jax.random.PRNGKey(0)
    pkey, xkey, tkey = jax.random.split(key, 3)

    B = 8  # small demo batch (kernel is built for TB in the thousands)
    params = init_params(pkey)
    kparams = prepare_params(params)

    x = jax.random.normal(xkey, (B, SHURURU), jnp.float32)
    t = jax.random.randint(tkey, (B,), 0, N_STEPS, jnp.int32)

    out = mlp_diffusion_forward(kparams, x, t)
    out = jax.block_until_ready(out)

    ref = _reference_forward(params, x, t)
    assert out.shape == (B, SHURURU)
    max_err = float(jnp.max(jnp.abs(out - ref)))
    # bf16 MXU operands (f32 accumulation) -> tolerance loosened vs. pure f32.
    assert max_err < 2e-2, max_err
    print("KERNEL_OK")
</pallas_src>

<mosaic_0001>
module attributes {stable_mosaic.version = 11 : i64} {
  func.func @_mlp_diffusion_kernel(%arg0: i32, %arg1: memref<8x10xf32, #tpu.memory_space<vmem>>, %arg2: memref<8x1xi32, #tpu.memory_space<vmem>>, %arg3: memref<256x128xbf16, #tpu.memory_space<vmem>>, %arg4: memref<256x128xbf16, #tpu.memory_space<vmem>>, %arg5: memref<256x128xbf16, #tpu.memory_space<vmem>>, %arg6: memref<128x10xbf16, #tpu.memory_space<vmem>>, %arg7: memref<1x10xf32, #tpu.memory_space<vmem>>, %arg8: memref<8x10xf32, #tpu.memory_space<vmem>>, %arg9: memref<8x256xbf16, #tpu.memory_space<vmem>>) attributes {dimension_semantics = [#tpu.dimension_semantics<parallel>], iteration_bounds = array<i64: 1>, scalar_prefetch = 0 : i64, scratch_operands = 1 : i64, tpu.core_type = #tpu.core_type<tc>, window_params = [{transform_indices = @transform_0, window_bounds = array<i64: 8, 10>}, {transform_indices = @transform_1, window_bounds = array<i64: 8, 1>}, {pipeline_mode = #tpu.pipeline_mode<synchronous>, transform_indices = @transform_2, window_bounds = array<i64: 256, 128>}, {pipeline_mode = #tpu.pipeline_mode<synchronous>, transform_indices = @transform_3, window_bounds = array<i64: 256, 128>}, {pipeline_mode = #tpu.pipeline_mode<synchronous>, transform_indices = @transform_4, window_bounds = array<i64: 256, 128>}, {pipeline_mode = #tpu.pipeline_mode<synchronous>, transform_indices = @transform_5, window_bounds = array<i64: 128, 10>}, {pipeline_mode = #tpu.pipeline_mode<synchronous>, transform_indices = @transform_6, window_bounds = array<i64: 1, 10>}, {transform_indices = @transform_7, window_bounds = array<i64: 8, 10>}]} {
    %c0 = arith.constant 0 : index
    %c0_0 = arith.constant 0 : index
    %0 = vector.load %arg2[%c0, %c0_0] : memref<8x1xi32, #tpu.memory_space<vmem>>, vector<8x1xi32>
    %1 = tpu.iota {dimensions = array<i32: 1>} : vector<8x128xi32>
    %2 = vector.broadcast %0 : vector<8x1xi32> to vector<8x128xi32>
    %3 = arith.cmpi eq, %1, %2 : vector<8x128xi32>
    %4 = arith.extui %3 : vector<8x128xi1> to vector<8x128xi32>
    %5 = arith.sitofp %4 : vector<8x128xi32> to vector<8x128xf32>
    %6 = arith.truncf %5 : vector<8x128xf32> to vector<8x128xbf16>
    %c0_1 = arith.constant 0 : index
    %c128 = arith.constant 128 : index
    %7 = vector.load %arg9[%c0_1, %c128] : memref<8x256xbf16, #tpu.memory_space<vmem>>, vector<8x128xbf16>
    tpu.vector_store %arg9[%c0_1, %c128], %6 {strides = array<i32>} : memref<8x256xbf16, #tpu.memory_space<vmem>>, vector<8x128xbf16>,
    %cst = arith.constant 0.000000e+00 : bf16
    %8 = vector.broadcast %cst : bf16 to vector<8x128xbf16>
    %c0_2 = arith.constant 0 : index
    %c0_3 = arith.constant 0 : index
    %9 = vector.load %arg9[%c0_2, %c0_3] : memref<8x256xbf16, #tpu.memory_space<vmem>>, vector<8x128xbf16>
    tpu.vector_store %arg9[%c0_2, %c0_3], %8 {strides = array<i32>} : memref<8x256xbf16, #tpu.memory_space<vmem>>, vector<8x128xbf16>,
    %c0_4 = arith.constant 0 : index
    %c0_5 = arith.constant 0 : index
    %10 = vector.load %arg1[%c0_4, %c0_5] : memref<8x10xf32, #tpu.memory_space<vmem>>, vector<8x10xf32>
    %11 = arith.truncf %10 : vector<8x10xf32> to vector<8x10xbf16>
    %c0_6 = arith.constant 0 : index
    %c0_7 = arith.constant 0 : index
    %12 = vector.load %arg9[%c0_6, %c0_7] : memref<8x256xbf16, #tpu.memory_space<vmem>>, vector<8x10xbf16>
    tpu.vector_store %arg9[%c0_6, %c0_7], %11 {strides = array<i32>} : memref<8x256xbf16, #tpu.memory_space<vmem>>, vector<8x10xbf16>,
    %c0_8 = arith.constant 0 : index
    %c0_9 = arith.constant 0 : index
    %13 = vector.load %arg9[%c0_8, %c0_9] : memref<8x256xbf16, #tpu.memory_space<vmem>>, vector<8x256xbf16>
    %c0_10 = arith.constant 0 : index
    %c0_11 = arith.constant 0 : index
    %14 = vector.load %arg3[%c0_10, %c0_11] : memref<256x128xbf16, #tpu.memory_space<vmem>>, vector<256x128xbf16>
    %cst_12 = arith.constant dense<0.000000e+00> : vector<8x128xf32>
    %15 = tpu.matmul %13, %14, %cst_12 {dimension_numbers = #tpu.dot_dimension_numbers<[1], [0], [0], [1], [0, 0, 1, 1], [], []>} : vector<8x256xbf16>, vector<256x128xbf16>, vector<8x128xf32> -> vector<8x128xf32>
    %16 = math.tanh %15 : vector<8x128xf32>
    %17 = arith.truncf %16 : vector<8x128xf32> to vector<8x128xbf16>
    %c0_13 = arith.constant 0 : index
    %c0_14 = arith.constant 0 : index
    %18 = vector.load %arg9[%c0_13, %c0_14] : memref<8x256xbf16, #tpu.memory_space<vmem>>, vector<8x128xbf16>
    tpu.vector_store %arg9[%c0_13, %c0_14], %17 {strides = array<i32>} : memref<8x256xbf16, #tpu.memory_space<vmem>>, vector<8x128xbf16>,
    %c0_15 = arith.constant 0 : index
    %c0_16 = arith.constant 0 : index
    %19 = vector.load %arg9[%c0_15, %c0_16] : memref<8x256xbf16, #tpu.memory_space<vmem>>, vector<8x256xbf16>
    %c0_17 = arith.constant 0 : index
    %c0_18 = arith.constant 0 : index
    %20 = vector.load %arg4[%c0_17, %c0_18] : memref<256x128xbf16, #tpu.memory_space<vmem>>, vector<256x128xbf16>
    %cst_19 = arith.constant dense<0.000000e+00> : vector<8x128xf32>
    %21 = tpu.matmul %19, %20, %cst_19 {dimension_numbers = #tpu.dot_dimension_numbers<[1], [0], [0], [1], [0, 0, 1, 1], [], []>} : vector<8x256xbf16>, vector<256x128xbf16>, vector<8x128xf32> -> vector<8x128xf32>
    %22 = math.tanh %21 : vector<8x128xf32>
    %23 = arith.truncf %22 : vector<8x128xf32> to vector<8x128xbf16>
    %c0_20 = arith.constant 0 : index
    %c0_21 = arith.constant 0 : index
    %24 = vector.load %arg9[%c0_20, %c0_21] : memref<8x256xbf16, #tpu.memory_space<vmem>>, vector<8x128xbf16>
    tpu.vector_store %arg9[%c0_20, %c0_21], %23 {strides = array<i32>} : memref<8x256xbf16, #tpu.memory_space<vmem>>, vector<8x128xbf16>,
    %c0_22 = arith.constant 0 : index
    %c0_23 = arith.constant 0 : index
    %25 = vector.load %arg9[%c0_22, %c0_23] : memref<8x256xbf16, #tpu.memory_space<vmem>>, vector<8x256xbf16>
    %c0_24 = arith.constant 0 : index
    %c0_25 = arith.constant 0 : index
    %26 = vector.load %arg5[%c0_24, %c0_25] : memref<256x128xbf16, #tpu.memory_space<vmem>>, vector<256x128xbf16>
    %cst_26 = arith.constant dense<0.000000e+00> : vector<8x128xf32>
    %27 = tpu.matmul %25, %26, %cst_26 {dimension_numbers = #tpu.dot_dimension_numbers<[1], [0], [0], [1], [0, 0, 1, 1], [], []>} : vector<8x256xbf16>, vector<256x128xbf16>, vector<8x128xf32> -> vector<8x128xf32>
    %28 = math.tanh %27 : vector<8x128xf32>
    %29 = arith.truncf %28 : vector<8x128xf32> to vector<8x128xbf16>
    %c0_27 = arith.constant 0 : index
    %c0_28 = arith.constant 0 : index
    %30 = vector.load %arg6[%c0_27, %c0_28] : memref<128x10xbf16, #tpu.memory_space<vmem>>, vector<128x10xbf16>
    %cst_29 = arith.constant dense<0.000000e+00> : vector<8x10xf32>
    %31 = tpu.matmul %29, %30, %cst_29 {dimension_numbers = #tpu.dot_dimension_numbers<[1], [0], [0], [1], [0, 0, 1, 1], [], []>} : vector<8x128xbf16>, vector<128x10xbf16>, vector<8x10xf32> -> vector<8x10xf32>
    %c0_30 = arith.constant 0 : index
    %c0_31 = arith.constant 0 : index
    %32 = vector.load %arg7[%c0_30, %c0_31] : memref<1x10xf32, #tpu.memory_space<vmem>>, vector<1x10xf32>
    %33 = vector.broadcast %32 : vector<1x10xf32> to vector<8x10xf32>
    %34 = arith.addf %31, %33 : vector<8x10xf32>
    %c0_32 = arith.constant 0 : index
    %c0_33 = arith.constant 0 : index
    %35 = vector.load %arg8[%c0_32, %c0_33] : memref<8x10xf32, #tpu.memory_space<vmem>>, vector<8x10xf32>
    tpu.vector_store %arg8[%c0_32, %c0_33], %34 {strides = array<i32>} : memref<8x10xf32, #tpu.memory_space<vmem>>, vector<8x10xf32>,
    return
  }
  func.func @transform_0(%arg0: i32) -> (i32, i32) {
    %c0_i32 = arith.constant 0 : i32
    %c0_i32_0 = arith.constant 0 : i32
    return %arg0, %c0_i32 : i32, i32
  }
  func.func @transform_1(%arg0: i32) -> (i32, i32) {
    %c0_i32 = arith.constant 0 : i32
    %c0_i32_0 = arith.constant 0 : i32
    return %arg0, %c0_i32 : i32, i32
  }
  func.func @transform_2(%arg0: i32) -> (i32, i32) {
    %c0_i32 = arith.constant 0 : i32
    %c0_i32_0 = arith.constant 0 : i32
    %c0_i32_1 = arith.constant 0 : i32
    return %c0_i32, %c0_i32_0 : i32, i32
  }
  func.func @transform_3(%arg0: i32) -> (i32, i32) {
    %c0_i32 = arith.constant 0 : i32
    %c0_i32_0 = arith.constant 0 : i32
    %c0_i32_1 = arith.constant 0 : i32
    return %c0_i32, %c0_i32_0 : i32, i32
  }
  func.func @transform_4(%arg0: i32) -> (i32, i32) {
    %c0_i32 = arith.constant 0 : i32
    %c0_i32_0 = arith.constant 0 : i32
    %c0_i32_1 = arith.constant 0 : i32
    return %c0_i32, %c0_i32_0 : i32, i32
  }
  func.func @transform_5(%arg0: i32) -> (i32, i32) {
    %c0_i32 = arith.constant 0 : i32
    %c0_i32_0 = arith.constant 0 : i32
    %c0_i32_1 = arith.constant 0 : i32
    return %c0_i32, %c0_i32_0 : i32, i32
  }
  func.func @transform_6(%arg0: i32) -> (i32, i32) {
    %c0_i32 = arith.constant 0 : i32
    %c0_i32_0 = arith.constant 0 : i32
    %c0_i32_1 = arith.constant 0 : i32
    return %c0_i32, %c0_i32_0 : i32, i32
  }
  func.func @transform_7(%arg0: i32) -> (i32, i32) {
    %c0_i32 = arith.constant 0 : i32
    %c0_i32_0 = arith.constant 0 : i32
    return %arg0, %c0_i32 : i32, i32
  }
}

</mosaic_0001>

<bundles_post_ra>
// kernel: tpu_custom_call.1
= control target key start
LH: loop header
LB: loop body
LE: loop exit
PB: predicated region body
PF: predicated region fallthrough
CT: control target
= control target key end

     0   :  { %12 = vsyncpa [#allocation4], 0  ;;  %s1177_s0 = inlined_call_operand.vmem [shape: f32[8,10], index: 0, kind: input, shape index: {}]   ;;  %s1178_s1 = inlined_call_operand.vmem [shape: s32[8,1], index: 1, kind: input, shape index: {}]   ;;  %s1179_s2 = inlined_call_operand.hbm [shape: bf16[256,128], index: 2, kind: input, shape index: {}]   ;;  %s1180_s3 = inlined_call_operand.hbm [shape: bf16[256,128], index: 3, kind: input, shape index: {}]   ;;  %s1181_s4 = inlined_call_operand.hbm [shape: bf16[256,128], index: 4, kind: input, shape index: {}]   ;;  %s1182_s5 = inlined_call_operand.vmem [shape: bf16[128,10], index: 5, kind: input, shape index: {}]   ;;  %s1183_s6 = inlined_call_operand.vmem [shape: f32[1,10], index: 6, kind: input, shape index: {}]   ;;  %s1184_s7 = inlined_call_operand.hbm [shape: f32[8,10], index: 7, kind: output, shape index: {}]  }
   0x1   :  { %13 = vsyncpa [#allocation7], 0 }
   0x2   :  { %14 = vsyncpa [#allocation5], 0  ;;  %s1073_s24 = smov [#allocation6]   ;;  %s1074_s26 = smov [#allocation3]  }
   0x3   :  { %s36_s25 = sshll.u32 %s1073_s24, 4  ;;  %s24_s27 = sshll.u32 %s1074_s26, 4  ;;  %s37_s25 = int_to_ptr.vmem [resolvable:$true] %s36_s25  ;;  %s25_s27 = int_to_ptr.vmem [resolvable:$true] %s24_s27 }
   0x4   :  { %s995_s28 = scalar_lea.vmem %s37_s25, 2048  ;;  %p1000_p1 = scmp.lt.s32.totalorder %s37_s25, %s37_s25 }
   0x5   :  { %p996_p0 = scmp.ne.s32.totalorder %s37_s25, %s995_s28  ;;  %p1001_p2 = scmp.lt.s32.totalorder %s995_s28, %s995_s28 }
   0x7   :  { %p1002_p3 = por %p1001_p2, %p1000_p1 }
   0x9   :  { %p1003_p4 = pnand %p1002_p3, %p996_p0 }
   0xb   :  { %1006 = shalt.err (!%p1003_p4)
}
   0xc   :  { %s1075_s29 = smov 64   ;;  %s1076_s30 = smov 4  }
   0xd   :  { %42 = dma.hbm_to_vmem [thread:$0]  %s1180_s3, 2048, %s37_s25, [#allocation7], %s1075_s29, %s1075_s29, %s1076_s30  }
   0xe   :  { %s1015_s10 = scalar_lea.vmem %s25_s27, 2048  ;;  %p1020_p6 = scmp.lt.s32.totalorder %s25_s27, %s25_s27 }
   0xf   :  { %p1016_p5 = scmp.ne.s32.totalorder %s25_s27, %s1015_s10  ;;  %p1021_p7 = scmp.lt.s32.totalorder %s1015_s10, %s1015_s10 }
  0x11   :  { %p1022_p8 = por %p1021_p7, %p1020_p6 }
  0x13   :  { %p1023_p9 = pnand %p1022_p8, %p1016_p5 }
  0x15   :  { %1026 = shalt.err (!%p1023_p9)
}
  0x16   :  { %30 = dma.hbm_to_vmem [thread:$0]  %s1179_s2, 2048, %s25_s27, [#allocation4], %s1075_s29, %s1075_s29, %s1076_s30  }
  0x17   :  { %s1077_s13 = smov [#allocation8]  }
  0x18   :  { %s48_s14 = sshll.u32 %s1077_s13, 4  ;;  %s49_s14 = int_to_ptr.vmem [resolvable:$true] %s48_s14 }
  0x19   :  { %s1035_s15 = scalar_lea.vmem %s49_s14, 2048  ;;  %p1040_p11 = scmp.lt.s32.totalorder %s49_s14, %s49_s14 }
  0x1a   :  { %p1036_p10 = scmp.ne.s32.totalorder %s49_s14, %s1035_s15  ;;  %p1041_p12 = scmp.lt.s32.totalorder %s1035_s15, %s1035_s15 }
  0x1c   :  { %p1042_p13 = por %p1041_p12, %p1040_p11 }
  0x1e   :  { %p1043_p0 = pnand %p1042_p13, %p1036_p10 }
  0x20   :  { %1046 = shalt.err (!%p1043_p0)
}
  0x21   :  { %54 = dma.hbm_to_vmem [thread:$0]  %s1181_s4, 2048, %s49_s14, [#allocation7], %s1075_s29, %s1075_s29, %s1076_s30  }
  0x22   :  { %1067 = dma.done.wait [#allocation4], 2048  }
  0x23   :  { %1068 = vsyncadd [#allocation4], 4294965248 }
  0x24   :  { %1069 = dma.done.wait [#allocation7], 4096  }
  0x25   :  { %1070 = vsyncadd [#allocation7], 4294963200  ;;  %v1078_v0 = vmov 0   ;;  %vm83_vm0 = vcmask 76800   ;;  %v81_v1 = vld [vmem:[%s1177_s0] sm:$0xff]  ;;  %v921_v6 = vld [vmem:[#allocation3 + $0x70] sm:$0xff]   ;;  %v70_v20 = vlaneseq }
  0x26   :  { %918 = vset.pattern.permute.xlu0 %v1078_v0  ;;  %80 = vst [vmem:[#allocation2] sm:$0xf] %v1078_v0  ;;  %v69_v2 = vld [vmem:[%s1178_s1] sm:$0xff]  ;;  %v82_v3 = vpack.c.bf16 %v81_v1, %v81_v1  ;;  %v922_v7 = vld [vmem:[#allocation3 + $0x30] sm:$0xff]   ;;  %v923_v8 = vld [vmem:[#allocation3 + $0x68] sm:$0xff]   ;;  %v1079_v23 = vmov 0.0  }
  0x27   :  { %73 = vperm.xlu0 %918, %v69_v2   ;;  %v919_v4 = vld [vmem:[#allocation3 + $0x78] sm:$0xff]   ;;  %v924_v9 = vld [vmem:[#allocation3 + $0x28] sm:$0xff]   ;;  %v925_v10 = vld [vmem:[#allocation3 + $0x60] sm:$0xff]   ;;  %v71_v21 = vand.u32 127, %v70_v20  ;;  %vm1080_vm2 = vmmov 0   ;;  %s1081_s12 = smov [#allocation9]  }
  0x28   :  { %v920_v5 = vld [vmem:[#allocation3 + $0x38] sm:$0xff]   ;;  %84 = vst.msk [vmem:[#allocation2] sm:$0xf] %vm83_vm0, %v82_v3  ;;  %814 = vmatprep.subr.bf16.mxu0 %v919_v4  ;;  %v926_v11 = vld [vmem:[#allocation3 + $0x20] sm:$0xff]   ;;  %v929_v14 = vld [vmem:[#allocation3 + $0x50] sm:$0xff]   ;;  %s740_s13 = sshll.u32 %s1081_s12, 4  ;;  %s741_s13 = int_to_ptr.vmem [resolvable:$true] %s740_s13 }
  0x29   :  { %815 = vmatpush3.bf16.msra.mxu0 %v920_v5  ;;  %v927_v12 = vld [vmem:[#allocation3 + $0x58] sm:$0xff]   ;;  %v930_v15 = vld [vmem:[#allocation3 + $0x10] sm:$0xff]   ;;  %v931_v16 = vld [vmem:[#allocation3 + $0x48] sm:$0xff]   ;;  %vm732_vm3 = vcmask 80896   ;;  %p1052_p2 = scmp.lt.s32.totalorder %s741_s13, %s741_s13 }
  0x2a   :  { %816 = vmatprep.subr.bf16.mxu0 %v921_v6  ;;  %v928_v13 = vld [vmem:[#allocation3 + $0x18] sm:$0xff]   ;;  %v932_v17 = vld [vmem:[#allocation3 + $0x8] sm:$0xff]   ;;  %v933_v18 = vld [vmem:[#allocation3 + $0x40] sm:$0xff]  }
  0x2b   :  { %v934_v19 = vld [vmem:[#allocation3] sm:$0xff]   ;;  %v937_v29 = vld [vmem:[#allocation6 + $0x78] sm:$0xff]   ;;  %v939_v31 = vld [vmem:[#allocation6 + $0x70] sm:$0xff]  }
  0x2c   :  { %v938_v30 = vld [vmem:[#allocation6 + $0x38] sm:$0xff]   ;;  %836 = vmatprep.subr.bf16.mxu1 %v937_v29  ;;  %v940_v32 = vld [vmem:[#allocation6 + $0x30] sm:$0xff]   ;;  %v941_v33 = vld [vmem:[#allocation6 + $0x68] sm:$0xff]  }
  0x2d   :  { %817 = vmatpush3.bf16.msra.mxu0 %v922_v7  ;;  %837 = vmatpush3.bf16.msra.mxu1 %v938_v30  ;;  %v942_v34 = vld [vmem:[#allocation6 + $0x28] sm:$0xff]   ;;  %v943_v35 = vld [vmem:[#allocation6 + $0x60] sm:$0xff]   ;;  %v945_v37 = vld [vmem:[#allocation6 + $0x58] sm:$0xff]  }
  0x2e   :  { %818 = vmatprep.subr.bf16.mxu0 %v923_v8  ;;  %838 = vmatprep.subr.bf16.mxu1 %v939_v31  ;;  %v944_v36 = vld [vmem:[#allocation6 + $0x20] sm:$0xff]   ;;  %v946_v38 = vld [vmem:[#allocation6 + $0x18] sm:$0xff]   ;;  %v947_v39 = vld [vmem:[#allocation6 + $0x50] sm:$0xff]  }
  0x2f   :  { %v948_v40 = vld [vmem:[#allocation6 + $0x10] sm:$0xff]   ;;  %v949_v41 = vld [vmem:[#allocation6 + $0x48] sm:$0xff]   ;;  %v951_v43 = vld [vmem:[#allocation6 + $0x40] sm:$0xff]  }
  0x30   :  { %v950_v42 = vld [vmem:[#allocation6 + $0x8] sm:$0xff]   ;;  %v952_v44 = vld [vmem:[#allocation6] sm:$0xff]   ;;  %v955_v55 = vld [vmem:[#allocation8 + $0x78] sm:$0xff]  }
  0x31   :  { %819 = vmatpush3.bf16.msra.mxu0 %v924_v9  ;;  %839 = vmatpush3.bf16.msra.mxu1 %v940_v32  ;;  %v956_v56 = vld [vmem:[#allocation8 + $0x38] sm:$0xff]   ;;  %v957_v57 = vld [vmem:[#allocation8 + $0x70] sm:$0xff]   ;;  %v959_v59 = vld [vmem:[#allocation8 + $0x68] sm:$0xff]  }
  0x32   :  { %820 = vmatprep.subr.bf16.mxu0 %v925_v10  ;;  %840 = vmatprep.subr.bf16.mxu1 %v941_v33  ;;  %v958_v58 = vld [vmem:[#allocation8 + $0x30] sm:$0xff]   ;;  %v960_v60 = vld [vmem:[#allocation8 + $0x28] sm:$0xff]   ;;  %v961_v61 = vld [vmem:[#allocation8 + $0x60] sm:$0xff]  }
  0x33   :  { %v962_v62 = vld [vmem:[#allocation8 + $0x20] sm:$0xff]   ;;  %v963_v63 = vld [vmem:[#allocation8 + $0x58] sm:$0xff]   ;;  %v965_v1 = vld [vmem:[#allocation8 + $0x50] sm:$0xff]  }
  0x34   :  { %v964_v0 = vld [vmem:[#allocation8 + $0x18] sm:$0xff]   ;;  %v966_v2 = vld [vmem:[#allocation8 + $0x10] sm:$0xff]   ;;  %v967_v3 = vld [vmem:[#allocation8 + $0x48] sm:$0xff]  }
  0x35   :  { %821 = vmatpush3.bf16.msra.mxu0 %v926_v11  ;;  %841 = vmatpush3.bf16.msra.mxu1 %v942_v34  ;;  %v968_v4 = vld [vmem:[#allocation8 + $0x8] sm:$0xff]   ;;  %v969_v5 = vld [vmem:[#allocation8 + $0x40] sm:$0xff]   ;;  %v973_v7 = vld [vmem:[%s1182_s5 + $0x38] sm:$0xff]  }
  0x36   :  { %822 = vmatprep.subr.bf16.mxu0 %v927_v12  ;;  %842 = vmatprep.subr.bf16.mxu1 %v943_v35  ;;  %v970_v6 = vld [vmem:[#allocation8] sm:$0xff]   ;;  %v974_v8 = vld [vmem:[%s1182_s5 + $0x30] sm:$0xff]   ;;  %v976_v20 = vld [vmem:[%s1182_s5 + $0x20] sm:$0xff]  }
  0x37   :  { %v975_v9 = vld [vmem:[%s1182_s5 + $0x28] sm:$0xff]   ;;  %v805_v33 = vld [vmem:[%s1183_s6] ss:$0 sm:$0xff] }
  0x39   :  { %823 = vmatpush3.bf16.msra.mxu0 %v928_v13  ;;  %843 = vmatpush3.bf16.msra.mxu1 %v944_v36 }
  0x3a   :  { %824 = vmatprep.subr.bf16.mxu0 %v929_v14  ;;  %844 = vmatprep.subr.bf16.mxu1 %v945_v37 }
  0x3d   :  { %825 = vmatpush3.bf16.msra.mxu0 %v930_v15  ;;  %845 = vmatpush3.bf16.msra.mxu1 %v946_v38 }
  0x3e   :  { %826 = vmatprep.subr.bf16.mxu0 %v931_v16  ;;  %846 = vmatprep.subr.bf16.mxu1 %v947_v39 }
  0x41   :  { %827 = vmatpush3.bf16.msra.mxu0 %v932_v17  ;;  %847 = vmatpush3.bf16.msra.mxu1 %v948_v40 }
  0x42   :  { %828 = vmatprep.subr.bf16.mxu0 %v933_v18  ;;  %848 = vmatprep.subr.bf16.mxu1 %v949_v41 }
  0x45   :  { %829 = vmatpush3.bf16.msra.mxu0 %v934_v19  ;;  %849 = vmatpush3.bf16.msra.mxu1 %v950_v42 }
  0x46   :  { %850 = vmatprep.subr.bf16.mxu1 %v951_v43  ;;  %858 = vmatprep.subr.bf16.mxu0 %v955_v55 }
  0x49   :  { %851 = vmatpush3.bf16.msra.mxu1 %v952_v44 }
  0x4a   :  { %889 = vmatprep.subr.bf16.mxu1 %v1079_v23 }
  0xa2   :  { %v74_v22 = vpop.permute.xlu0 %73 }
  0xa3   :  { %vm75_vm1 = vcmp.eq.s32.totalorder %v71_v21, %v74_v22  ;;  %v977_v21 = vld [vmem:[%s1182_s5 + $0x18] sm:$0xff]   ;;  %v978_v22 = vld [vmem:[%s1182_s5 + $0x10] sm:$0xff]  }
  0xa4   :  { %v750_v24 = vsel %vm75_vm1, 1.0, %v1079_v23 }
  0xa5   :  { %v78_v25 = vpack.c.bf16 %v750_v24, %v750_v24  ;;  %v979_v24 = vld [vmem:[%s1182_s5 + $0x8] sm:$0xff]  }
  0xa7   :  { %79 = vst [vmem:[#allocation2 + $0x4] sm:$0xf] %v78_v25  ;;  %v980_v25 = vld [vmem:[%s1182_s5] sm:$0xff]   ;;  %s1047_s5 = scalar_lea.vmem %s741_s13, 128 }
  0xa8   :  { %p1048_p1 = scmp.ne.s32.totalorder %s741_s13, %s1047_s5  ;;  %p1053_p3 = scmp.lt.s32.totalorder %s1047_s5, %s1047_s5 }
  0xaa   :  { %p1054_p4 = por %p1053_p3, %p1052_p2 }
  0xac   :  { %p1055_p5 = pnand %p1054_p4, %p1048_p1 }
  0xae   :  { %v85_v26 = vld [vmem:[#allocation2] sm:$0xff] }
  0xaf   :  { %v752_v27 = vcombine.high %v85_v26, %v85_v26  ;;  %v751_v28 = vcombine.low %v85_v26, %v85_v26 }
  0xb1   :  { %253 = vmatprep.mubr.bf16.mxu0 %v752_v27 }
  0xb2   :  { %254 = vmatmul.mubr.bf16.vlgmr.msra.gmra.mxu0 %v751_v28 }
  0xb3   :  { %859 = vmatpush3.bf16.msra.mxu0 %v956_v56 }
  0xb4   :  { %860 = vmatprep.subr.bf16.mxu0 %v957_v57 }
  0xb7   :  { %861 = vmatpush3.bf16.msra.mxu0 %v958_v58 }
  0xb8   :  { %862 = vmatprep.subr.bf16.mxu0 %v959_v59 }
  0xbb   :  { %863 = vmatpush3.bf16.msra.mxu0 %v960_v60 }
  0xbc   :  { %864 = vmatprep.subr.bf16.mxu0 %v961_v61 }
  0xbf   :  { %865 = vmatpush3.bf16.msra.mxu0 %v962_v62 }
  0xc0   :  { %866 = vmatprep.subr.bf16.mxu0 %v963_v63 }
  0xc3   :  { %867 = vmatpush3.bf16.msra.mxu0 %v964_v0 }
  0xc4   :  { %868 = vmatprep.subr.bf16.mxu0 %v965_v1 }
  0xc7   :  { %869 = vmatpush3.bf16.msra.mxu0 %v966_v2 }
  0xc8   :  { %870 = vmatprep.subr.bf16.mxu0 %v967_v3 }
  0xcb   :  { %871 = vmatpush3.bf16.msra.mxu0 %v968_v4 }
  0xcc   :  { %872 = vmatprep.subr.bf16.mxu0 %v969_v5 }
  0xcf   :  { %873 = vmatpush3.bf16.msra.mxu0 %v970_v6 }
 0x172   :  { %v830_v45 = vpop.f32.mrf.mxu0 }
 0x174   :  { %v831_v46 = vpop.f32.mrf.mxu0 }
 0x175   :  { %v832_v47 = vadd.f32 %v831_v46, %v830_v45 }
 0x176   :  { %v833_v48 = vpop.f32.mrf.mxu0 }
 0x177   :  { %981 = vtanh.f32 %v832_v47 }
 0x178   :  { %v834_v49 = vpop.f32.mrf.mxu0 }
 0x184   :  { %v982_v50 = vpop.eup %981 }
 0x185   :  { %v262_v51 = vpack.c.bf16 %v982_v50, %v982_v50 }
 0x187   :  { %263 = vst [vmem:[#allocation2] sm:$0xf] %v262_v51 }
 0x18e   :  { %v264_v52 = vld [vmem:[#allocation2] sm:$0xff] }
 0x18f   :  { %v770_v53 = vcombine.high %v264_v52, %v264_v52  ;;  %v769_v54 = vcombine.low %v264_v52, %v264_v52 }
 0x191   :  { %432 = vmatprep.mubr.bf16.mxu1 %v770_v53 }
 0x192   :  { %433 = vmatmul.mubr.bf16.vlgmr.msra.gmra.mxu1 %v769_v54 }
 0x193   :  { %890 = vmatpush3.bf16.msra.mxu1 %v973_v7  ;;  %905 = vmatprep.mubr.msk.bf16.mxu1 %vm1080_vm2, %v1079_v23 }
 0x194   :  { %891 = vmatprep.subr.bf16.mxu1 %v1079_v23 }
 0x197   :  { %892 = vmatpush3.bf16.msra.mxu1 %v974_v8 }
 0x198   :  { %893 = vmatprep.subr.bf16.mxu1 %v1079_v23 }
 0x19b   :  { %894 = vmatpush3.bf16.msra.mxu1 %v975_v9 }
 0x19c   :  { %895 = vmatprep.subr.bf16.mxu1 %v1079_v23 }
 0x19f   :  { %896 = vmatpush3.bf16.msra.mxu1 %v976_v20 }
 0x1a0   :  { %897 = vmatprep.subr.bf16.mxu1 %v1079_v23 }
 0x1a3   :  { %898 = vmatpush3.bf16.msra.mxu1 %v977_v21 }
 0x1a4   :  { %899 = vmatprep.subr.bf16.mxu1 %v1079_v23 }
 0x1a7   :  { %900 = vmatpush3.bf16.msra.mxu1 %v978_v22 }
 0x1a8   :  { %901 = vmatprep.subr.bf16.mxu1 %v1079_v23 }
 0x1ab   :  { %902 = vmatpush3.bf16.msra.mxu1 %v979_v24 }
 0x1ac   :  { %903 = vmatprep.subr.bf16.mxu1 %v1079_v23 }
 0x1af   :  { %904 = vmatpush3.bf16.msra.mxu1 %v980_v25 }
 0x252   :  { %v852_v10 = vpop.f32.mrf.mxu1 }
 0x254   :  { %v853_v11 = vpop.f32.mrf.mxu1 }
 0x255   :  { %v854_v12 = vadd.f32 %v853_v11, %v852_v10 }
 0x256   :  { %v855_v13 = vpop.f32.mrf.mxu1 }
 0x257   :  { %983 = vtanh.f32 %v854_v12 }
 0x258   :  { %v856_v14 = vpop.f32.mrf.mxu1 }
 0x264   :  { %v984_v15 = vpop.eup %983 }
 0x265   :  { %v441_v16 = vpack.c.bf16 %v984_v15, %v984_v15 }
 0x267   :  { %442 = vst [vmem:[#allocation2] sm:$0xf] %v441_v16 }
 0x26e   :  { %v443_v17 = vld [vmem:[#allocation2] sm:$0xff] }
 0x26f   :  { %v787_v18 = vcombine.low %v443_v17, %v443_v17  ;;  %v788_v19 = vcombine.high %v443_v17, %v443_v17 }
 0x271   :  { %611 = vmatprep.mubr.bf16.mxu0 %v788_v19 }
 0x272   :  { %612 = vmatmul.mubr.bf16.vlgmr.msra.gmra.mxu0 %v787_v18 }
 0x332   :  { %v874_v26 = vpop.f32.mrf.mxu0 }
 0x334   :  { %v875_v27 = vpop.f32.mrf.mxu0 }
 0x335   :  { %v876_v28 = vadd.f32 %v875_v27, %v874_v26 }
 0x336   :  { %v877_v29 = vpop.f32.mrf.mxu0 }
 0x337   :  { %985 = vtanh.f32 %v876_v28 }
 0x338   :  { %v878_v30 = vpop.f32.mrf.mxu0 }
 0x344   :  { %v986_v31 = vpop.eup %985 }
 0x345   :  { %v620_v32 = vpack.c.bf16 %v986_v31, %v986_v31 }
 0x347   :  { %906 = vmatmul.mubr.bf16.vlgmr.msra.gmra.mxu1 %v620_v32 }
 0x407   :  { %v726_v34 = vpop.f32.mrf.mxu1 }
 0x408   :  { %v727_v35 = vadd.f32 %v805_v33, %v726_v34 }
 0x409   :  { %v907_v23 = vpop.f32.mrf.mxu1 }
 0x40a   :  { %733 = vst.msk [vmem:[#allocation9] sm:$0xff] %vm732_vm3, %v727_v35 }
 0x40b   :  { %v729_v36 = vpop.f32.mrf.mxu1 }
 0x40c   :  { %1058 = shalt.err (!%p1055_p5)
}
 0x40d   :  { %743 = dma.vmem_to_hbm [thread:$0]  %s741_s13, 128, %s1184_s7, [#allocation5]   ;;  %v908_v37 = vpop.f32.mrf.mxu1 }
 0x40e   :  { %1071 = dma.done.wait [#allocation5], 128  }
 0x40f   :  { %1072 = vsyncadd [#allocation5], 4294967168 }
 0x410   :  { %747 = vsyncpa [#allocation4], 1 }
 0x411   :  { %748 = vsyncpa [#allocation7], 1 }
 0x412   :  { %749 = vsyncpa [#allocation5], 1 }

</bundles_post_ra>
